<compile_context>
chip_gen: v5e
topology: v5e:2x2
jax: 0.10.0
libtpu: 0.0.40
codegen_flags: <defaults>
</compile_context>

<pallas_src>
import jax
import jax.numpy as jnp
from jax.experimental import pallas as pl
from jax.experimental.pallas import tpu as pltpu

EPS_GN = 1e-5   # nn.GroupNorm default eps
EPS_BN = 1e-5   # nn.BatchNorm2d default eps

_ACT_BUDGET = 20 * 2**20    # VMEM budget for the per-column activation working set (kernel 2)
_VMEM_CAP = 48 * 2**20      # safe scoped-VMEM ceiling across v5e / v6e / v7x


def _pick_tile_n(N, C, hid):
    """Largest lane-dense spatial tile that keeps the MLP working set in budget."""
    per_col = 4 * (5 * C + 2 * hid)            # ~f32 bytes per spatial column (kernel 2)
    max_cols = _ACT_BUDGET // per_col
    if N <= max_cols or N % 128 != 0:
        return N                               # full-N tile (block == full dim is always legal)
    max_k = max(1, min(max_cols // 128, N // 128))
    blocks = N // 128
    for k in range(max_k, 0, -1):              # largest multiple of 128 that divides N
        if blocks % k == 0:
            return k * 128
    return N


def _vmem_limit(C, hid, tn):
    est = 4 * (5 * C + 2 * hid) * tn           # double-buffered act blocks + f32 temps
    est += 2 * 2 * (C * C + 2 * hid * C)       # double-buffered bf16 weights
    est += 1 << 20                             # per-channel vectors / stats / slack
    return int(min(_VMEM_CAP, max(2 * est, 24 * 2**20)))


# --------------------------------------------------------------------------------------
# Kernel 1: GN1 + depthwise(1x1)+BN+SiLU + pointwise(1x1)+BN+SiLU + layer_scale_1 residual
#           and accumulation of per-sample sum / sum-of-squares of x1 for GN2.
# --------------------------------------------------------------------------------------
def _branch1_kernel(x_ref, s1_ref, bb1_ref, wp_ref, pb_ref, ls1_ref,
                    x1_ref, ssum_ref, ssq_ref):
    # Blocks: x/x1 (C, TN) f32; s1/bb1/pb/ls1 (C, 1) f32; wp (C, C) bf16; ssum/ssq (1, 128).
    n = pl.program_id(1)

    x = x_ref[...]                                             # (C, TN) f32
    # GroupNorm(1,C) affine + depthwise 1x1 conv + BN folded into one per-channel FMA
    # (per-sample mean/rstd folded into s1/bb1 by the wrapper).
    z = x * s1_ref[...] + bb1_ref[...]
    z = z * jax.nn.sigmoid(z)                                  # SiLU
    # pointwise 1x1 conv (BN scale folded into bf16 weight) + BN bias + SiLU
    z = jnp.dot(wp_ref[...], z.astype(jnp.bfloat16),
                preferred_element_type=jnp.float32) + pb_ref[...]
    z = z * jax.nn.sigmoid(z)

    x1 = x + ls1_ref[...] * z                                  # residual + layer_scale_1
    x1_ref[...] = x1

    # Single-pass GN2 statistics, carried across the "arbitrary" N axis.
    @pl.when(n == 0)
    def _():
        ssum_ref[...] = jnp.zeros_like(ssum_ref)
        ssq_ref[...] = jnp.zeros_like(ssq_ref)
    ssum_ref[...] += jnp.sum(x1, keepdims=True)
    ssq_ref[...] += jnp.sum(x1 * x1, keepdims=True)


# --------------------------------------------------------------------------------------
# Kernel 2: GN2 (stats from kernel 1) + Mlp (1x1 conv -> exact GELU -> 1x1 conv)
#           with layer_scale_2 folded into fc2, plus the second residual.
# --------------------------------------------------------------------------------------
def _branch2_kernel(x1_ref, s2_ref, bh_ref, w1_ref, w2_ref, b2_ref, o_ref):
    # Blocks: x1/o (C, TN) f32; s2/b2 (C, 1); bh (hid, 1); w1 (hid, C) bf16; w2 (C, hid) bf16.
    x1 = x1_ref[...]
    # GN2 gamma and per-sample rstd folded into s2; (beta - mu*rstd*gamma) was pushed
    # through fc1 into bh, so normalization is a single multiply here.
    xn = (x1 * s2_ref[...]).astype(jnp.bfloat16)
    h = jnp.dot(w1_ref[...], xn, preferred_element_type=jnp.float32) + bh_ref[...]
    h = jax.nn.gelu(h, approximate=False)                      # nn.GELU default = exact erf
    y = jnp.dot(w2_ref[...], h.astype(jnp.bfloat16),
                preferred_element_type=jnp.float32) + b2_ref[...]
    o_ref[...] = x1 + y                                        # layer_scale_2 folded into w2/b2


def light_mlp_forward(x_nchw, kparams, tile_n=None):
    """x_nchw: [B, C, H, W] float32 -> [B, C, H, W] float32."""
    B, C, H, W = x_nchw.shape
    N = H * W
    (ca, cb, wp, pb, ls1, g2, beta2, w1, b1, w2f, b2f) = kparams
    hid = w1.shape[0]

    # Channels-first, spatial-flattened view (free reshape from NCHW; N on the lane axis).
    x = x_nchw.reshape(B, C, N).astype(jnp.float32)

    if tile_n is None:
        tile_n = _pick_tile_n(N, C, hid)
    assert tile_n == N or (tile_n % 128 == 0 and N % tile_n == 0)
    nt = N // tile_n
    vlim = _vmem_limit(C, hid, tile_n)

    # ---- GN1 statistics (one cheap XLA reduction), folded with the dwconv+BN affine ----
    mu1 = jnp.mean(x, axis=(1, 2))
    var1 = jnp.mean(jnp.square(x), axis=(1, 2)) - jnp.square(mu1)
    rstd1 = jax.lax.rsqrt(var1 + EPS_GN)
    s1 = rstd1[:, None] * ca[None, :]                     # (B, C)
    bb1 = cb[None, :] - mu1[:, None] * s1                 # (B, C)
    s1 = s1[:, :, None]                                   # (B, C, 1)
    bb1 = bb1[:, :, None]

    act_spec = pl.BlockSpec((None, C, tile_n), lambda b, n: (b, 0, n))
    stat_spec = pl.BlockSpec((None, 1, 128), lambda b, n: (b, 0, 0))
    vec_spec = lambda d: pl.BlockSpec((d, 1), lambda b, n: (0, 0))
    per_sample_spec = lambda d: pl.BlockSpec((None, d, 1), lambda b, n: (b, 0, 0))
    mat_spec = lambda r, c: pl.BlockSpec((r, c), lambda b, n: (0, 0))

    x1, ssum, ssq = pl.pallas_call(
        _branch1_kernel,
        out_shape=(jax.ShapeDtypeStruct((B, C, N), jnp.float32),
                   jax.ShapeDtypeStruct((B, 1, 128), jnp.float32),
                   jax.ShapeDtypeStruct((B, 1, 128), jnp.float32)),
        grid=(B, nt),
        in_specs=[act_spec, per_sample_spec(C), per_sample_spec(C),
                  mat_spec(C, C), vec_spec(C), vec_spec(C)],
        out_specs=(act_spec, stat_spec, stat_spec),
        compiler_params=pltpu.CompilerParams(
            dimension_semantics=("parallel", "arbitrary"),
            vmem_limit_bytes=vlim),
    )(x, s1, bb1, wp, pb, ls1)

    # ---- GN2 statistics from the accumulated sum / sum-of-squares; fold affine + fc1 bias ----
    cnt = float(C * N)
    mu2 = ssum[:, 0, 0] / cnt
    var2 = ssq[:, 0, 0] / cnt - jnp.square(mu2)
    rstd2 = jax.lax.rsqrt(var2 + EPS_GN)
    s2 = (rstd2[:, None] * g2[None, :])[:, :, None]                     # (B, C, 1)
    shift = beta2[None, :] - (mu2 * rstd2)[:, None] * g2[None, :]       # (B, C)
    bh = (shift @ w1.T + b1[None, :])[:, :, None]                       # (B, hid, 1)

    out = pl.pallas_call(
        _branch2_kernel,
        out_shape=jax.ShapeDtypeStruct((B, C, N), jnp.float32),
        grid=(B, nt),
        in_specs=[act_spec, per_sample_spec(C), per_sample_spec(hid),
                  mat_spec(hid, C), mat_spec(C, hid), vec_spec(C)],
        out_specs=act_spec,
        compiler_params=pltpu.CompilerParams(
            dimension_semantics=("parallel", "parallel"),
            vmem_limit_bytes=vlim),
    )(x1, s2, bh, w1.astype(jnp.bfloat16), w2f, b2f)

    return out.reshape(B, C, H, W)


def init_params(key, C, mlp_ratio=4.0, layer_scale_init_value=1e-5):
    """Synthetic parameters mirroring the module's __init__; returns (kernel_params, raw_params)."""
    hid = int(C * mlp_ratio)
    ks = jax.random.split(key, 12)

    # Depthwise conv weight (C,1,1,1) -> per-channel scalar; eval-mode BatchNorms.
    wd = jax.random.normal(ks[0], (C,), jnp.float32) * 0.1 + 1.0
    bn1_g, bn1_b = jnp.ones((C,)), jnp.zeros((C,))
    bn1_m = jax.random.normal(ks[1], (C,)) * 0.05
    bn1_v = jnp.abs(jax.random.normal(ks[2], (C,))) * 0.1 + 1.0
    wp_t = jax.random.normal(ks[3], (C, C)) * (1.0 / jnp.sqrt(C))      # pointwise conv (C_out, C_in)
    bn2_g, bn2_b = jnp.ones((C,)), jnp.zeros((C,))
    bn2_m = jax.random.normal(ks[4], (C,)) * 0.05
    bn2_v = jnp.abs(jax.random.normal(ks[5], (C,))) * 0.1 + 1.0
    gn1_g = jnp.ones((C,)) + jax.random.normal(ks[6], (C,)) * 0.02
    gn1_b = jax.random.normal(ks[7], (C,)) * 0.02
    gn2_g = jnp.ones((C,)) + jax.random.normal(ks[8], (C,)) * 0.02
    gn2_b = jax.random.normal(ks[9], (C,)) * 0.02
    w1_t = jax.random.normal(ks[10], (hid, C)) * 0.02                  # Mlp fc1 (hid, C)
    b1 = jnp.zeros((hid,))
    w2_t = jax.random.normal(ks[11], (C, hid)) * 0.02                  # Mlp fc2 (C, hid)
    b2 = jnp.zeros((C,))
    ls1 = layer_scale_init_value * jnp.ones((C,))
    ls2 = layer_scale_init_value * jnp.ones((C,))

    raw = (wd, bn1_g, bn1_b, bn1_m, bn1_v, wp_t, bn2_g, bn2_b, bn2_m, bn2_v,
           gn1_g, gn1_b, gn2_g, gn2_b, w1_t, b1, w2_t, b2, ls1, ls2)

    # ---- fold eval-mode BN + GroupNorm affines + layer_scale_2 into weights (host glue) ----
    s1bn = bn1_g / jnp.sqrt(bn1_v + EPS_BN)
    a = wd * s1bn                                  # depthwise 1x1 conv scale * BN1 scale
    d = bn1_b - bn1_m * s1bn                       # BN1 bias
    ca = a * gn1_g                                 # GN1 gamma folded in
    cb = a * gn1_b + d                             # GN1 beta folded in
    s2bn = bn2_g / jnp.sqrt(bn2_v + EPS_BN)
    wp = (wp_t * s2bn[:, None]).astype(jnp.bfloat16)       # (C, C), BN2 scale folded
    pb = (bn2_b - bn2_m * s2bn).reshape(C, 1)
    w2f = (ls2[:, None] * w2_t).astype(jnp.bfloat16)       # (C, hid), layer_scale_2 folded
    b2f = (ls2 * b2).reshape(C, 1)

    kparams = (ca.astype(jnp.float32), cb.astype(jnp.float32), wp,
               pb.astype(jnp.float32), ls1.reshape(C, 1).astype(jnp.float32),
               gn2_g.astype(jnp.float32), gn2_b.astype(jnp.float32),
               w1_t.astype(jnp.float32), b1.astype(jnp.float32),
               w2f, b2f.astype(jnp.float32))
    return kparams, raw


def reference_forward(x_nchw, raw):
    """Pure-JAX f32 reference with the same math as the PyTorch forward (eval-mode BN)."""
    B, C, H, W = x_nchw.shape
    x = x_nchw.reshape(B, C, H * W).astype(jnp.float32)
    (wd, bn1_g, bn1_b, bn1_m, bn1_v, wp_t, bn2_g, bn2_b, bn2_m, bn2_v,
     gn1_g, gn1_b, gn2_g, gn2_b, w1_t, b1, w2_t, b2, ls1, ls2) = raw

    def gn(v, g, b):
        mu = jnp.mean(v, axis=(1, 2), keepdims=True)
        var = jnp.mean((v - mu) ** 2, axis=(1, 2), keepdims=True)
        return (v - mu) / jnp.sqrt(var + EPS_GN) * g[None, :, None] + b[None, :, None]

    def bn(v, g, b, m, var):
        return ((v - m[None, :, None]) / jnp.sqrt(var[None, :, None] + EPS_BN)
                * g[None, :, None] + b[None, :, None])

    z = gn(x, gn1_g, gn1_b) * wd[None, :, None]              # depthwise 1x1 conv
    z = jax.nn.silu(bn(z, bn1_g, bn1_b, bn1_m, bn1_v))
    z = jnp.einsum('oc,bcn->bon', wp_t, z)                   # pointwise 1x1 conv
    z = jax.nn.silu(bn(z, bn2_g, bn2_b, bn2_m, bn2_v))
    x1 = x + ls1[None, :, None] * z
    xn = gn(x1, gn2_g, gn2_b)
    h = jnp.einsum('oc,bcn->bon', w1_t, xn) + b1[None, :, None]
    h = jax.nn.gelu(h, approximate=False)
    y = jnp.einsum('oc,bcn->bon', w2_t, h) + b2[None, :, None]
    out = x1 + ls2[None, :, None] * y
    return out.reshape(B, C, H, W)


if __name__ == "__main__":
    key = jax.random.PRNGKey(0)
    kx, kp = jax.random.split(key)
    B, C, H, W = 2, 16, 16, 16          # in_channels == out_channels (required by residual)
    x = jax.random.normal(kx, (B, C, H, W), jnp.float32)
    kparams, raw = init_params(kp, C, mlp_ratio=4.0)

    # tile_n=128 with N=256 forces two spatial tiles -> exercises the cross-tile GN2 accumulation.
    out = light_mlp_forward(x, kparams, tile_n=128)
    out = jax.block_until_ready(out)

    ref = reference_forward(x, raw)
    assert out.shape == (B, C, H, W)
    max_err = float(jnp.max(jnp.abs(out - ref)))
    assert jnp.allclose(out, ref, atol=1e-4, rtol=1e-4), max_err
    print("KERNEL_OK")
</pallas_src>

<mosaic_0001>
module attributes {stable_mosaic.version = 11 : i64} {
  func.func @_branch1_kernel(%arg0: i32, %arg1: i32, %arg2: memref<1x16x128xf32, #tpu.memory_space<vmem>>, %arg3: memref<1x16x1xf32, #tpu.memory_space<vmem>>, %arg4: memref<1x16x1xf32, #tpu.memory_space<vmem>>, %arg5: memref<16x16xbf16, #tpu.memory_space<vmem>>, %arg6: memref<16x1xf32, #tpu.memory_space<vmem>>, %arg7: memref<16x1xf32, #tpu.memory_space<vmem>>, %arg8: memref<1x16x128xf32, #tpu.memory_space<vmem>>, %arg9: memref<1x1x128xf32, #tpu.memory_space<vmem>>, %arg10: memref<1x1x128xf32, #tpu.memory_space<vmem>>) attributes {dimension_semantics = [#tpu.dimension_semantics<parallel>, #tpu.dimension_semantics<arbitrary>], iteration_bounds = array<i64: 2, 2>, scalar_prefetch = 0 : i64, scratch_operands = 0 : i64, tpu.core_type = #tpu.core_type<tc>, window_params = [{transform_indices = @transform_0, window_bounds = array<i64: 1, 16, 128>}, {transform_indices = @transform_1, window_bounds = array<i64: 1, 16, 1>}, {transform_indices = @transform_2, window_bounds = array<i64: 1, 16, 1>}, {pipeline_mode = #tpu.pipeline_mode<synchronous>, transform_indices = @transform_3, window_bounds = array<i64: 16, 16>}, {pipeline_mode = #tpu.pipeline_mode<synchronous>, transform_indices = @transform_4, window_bounds = array<i64: 16, 1>}, {pipeline_mode = #tpu.pipeline_mode<synchronous>, transform_indices = @transform_5, window_bounds = array<i64: 16, 1>}, {transform_indices = @transform_6, window_bounds = array<i64: 1, 16, 128>}, {transform_indices = @transform_7, window_bounds = array<i64: 1, 1, 128>}, {transform_indices = @transform_8, window_bounds = array<i64: 1, 1, 128>}]} {
    %c0 = arith.constant 0 : index
    %c0_0 = arith.constant 0 : index
    %c0_1 = arith.constant 0 : index
    %0 = vector.load %arg2[%c0, %c0_0, %c0_1] : memref<1x16x128xf32, #tpu.memory_space<vmem>>, vector<1x16x128xf32>
    %1 = vector.shape_cast %0 : vector<1x16x128xf32> to vector<16x128xf32>
    %c0_2 = arith.constant 0 : index
    %c0_3 = arith.constant 0 : index
    %c0_4 = arith.constant 0 : index
    %2 = vector.load %arg3[%c0_2, %c0_3, %c0_4] : memref<1x16x1xf32, #tpu.memory_space<vmem>>, vector<1x16x1xf32>
    %3 = vector.shape_cast %2 : vector<1x16x1xf32> to vector<16x1xf32>
    %4 = vector.broadcast %3 : vector<16x1xf32> to vector<16x128xf32>
    %5 = arith.mulf %1, %4 : vector<16x128xf32>
    %c0_5 = arith.constant 0 : index
    %c0_6 = arith.constant 0 : index
    %c0_7 = arith.constant 0 : index
    %6 = vector.load %arg4[%c0_5, %c0_6, %c0_7] : memref<1x16x1xf32, #tpu.memory_space<vmem>>, vector<1x16x1xf32>
    %7 = vector.shape_cast %6 : vector<1x16x1xf32> to vector<16x1xf32>
    %8 = vector.broadcast %7 : vector<16x1xf32> to vector<16x128xf32>
    %9 = arith.addf %5, %8 : vector<16x128xf32>
    %10 = arith.negf %9 : vector<16x128xf32>
    %11 = math.exp %10 : vector<16x128xf32>
    %cst = arith.constant 1.000000e+00 : f32
    %12 = vector.broadcast %cst : f32 to vector<16x128xf32>
    %13 = arith.addf %12, %11 : vector<16x128xf32>
    %14 = arith.divf %12, %13 : vector<16x128xf32>
    %15 = arith.mulf %9, %14 : vector<16x128xf32>
    %c0_8 = arith.constant 0 : index
    %c0_9 = arith.constant 0 : index
    %16 = vector.load %arg5[%c0_8, %c0_9] : memref<16x16xbf16, #tpu.memory_space<vmem>>, vector<16x16xbf16>
    %17 = arith.truncf %15 : vector<16x128xf32> to vector<16x128xbf16>
    %cst_10 = arith.constant dense<0.000000e+00> : vector<16x128xf32>
    %18 = tpu.matmul %16, %17, %cst_10 {dimension_numbers = #tpu.dot_dimension_numbers<[1], [0], [0], [1], [0, 0, 1, 1], [], []>} : vector<16x16xbf16>, vector<16x128xbf16>, vector<16x128xf32> -> vector<16x128xf32>
    %c0_11 = arith.constant 0 : index
    %c0_12 = arith.constant 0 : index
    %19 = vector.load %arg6[%c0_11, %c0_12] : memref<16x1xf32, #tpu.memory_space<vmem>>, vector<16x1xf32>
    %20 = vector.broadcast %19 : vector<16x1xf32> to vector<16x128xf32>
    %21 = arith.addf %18, %20 : vector<16x128xf32>
    %22 = arith.negf %21 : vector<16x128xf32>
    %23 = math.exp %22 : vector<16x128xf32>
    %cst_13 = arith.constant 1.000000e+00 : f32
    %24 = vector.broadcast %cst_13 : f32 to vector<16x128xf32>
    %25 = arith.addf %24, %23 : vector<16x128xf32>
    %26 = arith.divf %24, %25 : vector<16x128xf32>
    %27 = arith.mulf %21, %26 : vector<16x128xf32>
    %c0_14 = arith.constant 0 : index
    %c0_15 = arith.constant 0 : index
    %28 = vector.load %arg7[%c0_14, %c0_15] : memref<16x1xf32, #tpu.memory_space<vmem>>, vector<16x1xf32>
    %29 = vector.broadcast %28 : vector<16x1xf32> to vector<16x128xf32>
    %30 = arith.mulf %29, %27 : vector<16x128xf32>
    %31 = arith.addf %1, %30 : vector<16x128xf32>
    %c0_16 = arith.constant 0 : index
    %c0_17 = arith.constant 0 : index
    %c0_18 = arith.constant 0 : index
    %32 = vector.load %arg8[%c0_16, %c0_17, %c0_18] : memref<1x16x128xf32, #tpu.memory_space<vmem>>, vector<1x16x128xf32>
    %33 = vector.shape_cast %32 : vector<1x16x128xf32> to vector<16x128xf32>
    %34 = vector.shape_cast %31 : vector<16x128xf32> to vector<1x16x128xf32>
    tpu.vector_store %arg8[%c0_16, %c0_17, %c0_18], %34 {strides = array<i32>} : memref<1x16x128xf32, #tpu.memory_space<vmem>>, vector<1x16x128xf32>,
    %c0_i32 = arith.constant 0 : i32
    %35 = arith.cmpi eq, %arg1, %c0_i32 : i32
    %36 = arith.extui %35 : i1 to i32
    %c0_i32_19 = arith.constant 0 : i32
    %37 = arith.cmpi ne, %36, %c0_i32_19 : i32
    scf.if %37 {
      %cst_34 = arith.constant 0.000000e+00 : f32
      %63 = vector.broadcast %cst_34 : f32 to vector<1x128xf32>
      %c0_35 = arith.constant 0 : index
      %c0_36 = arith.constant 0 : index
      %c0_37 = arith.constant 0 : index
      %64 = vector.load %arg9[%c0_35, %c0_36, %c0_37] : memref<1x1x128xf32, #tpu.memory_space<vmem>>, vector<1x1x128xf32>
      %65 = vector.shape_cast %64 : vector<1x1x128xf32> to vector<1x128xf32>
      %66 = vector.shape_cast %63 : vector<1x128xf32> to vector<1x1x128xf32>
      tpu.vector_store %arg9[%c0_35, %c0_36, %c0_37], %66 {strides = array<i32>} : memref<1x1x128xf32, #tpu.memory_space<vmem>>, vector<1x1x128xf32>,
      %cst_38 = arith.constant 0.000000e+00 : f32
      %67 = vector.broadcast %cst_38 : f32 to vector<1x128xf32>
      %c0_39 = arith.constant 0 : index
      %c0_40 = arith.constant 0 : index
      %c0_41 = arith.constant 0 : index
      %68 = vector.load %arg10[%c0_39, %c0_40, %c0_41] : memref<1x1x128xf32, #tpu.memory_space<vmem>>, vector<1x1x128xf32>
      %69 = vector.shape_cast %68 : vector<1x1x128xf32> to vector<1x128xf32>
      %70 = vector.shape_cast %67 : vector<1x128xf32> to vector<1x1x128xf32>
      tpu.vector_store %arg10[%c0_39, %c0_40, %c0_41], %70 {strides = array<i32>} : memref<1x1x128xf32, #tpu.memory_space<vmem>>, vector<1x1x128xf32>,
    } else {
    }
    %c0_20 = arith.constant 0 : index
    %c0_21 = arith.constant 0 : index
    %c0_22 = arith.constant 0 : index
    %38 = vector.load %arg9[%c0_20, %c0_21, %c0_22] : memref<1x1x128xf32, #tpu.memory_space<vmem>>, vector<1x1x128xf32>
    %39 = vector.shape_cast %38 : vector<1x1x128xf32> to vector<1x128xf32>
    %40 = vector.shape_cast %31 : vector<16x128xf32> to vector<1x16x128xf32>
    %cst_23 = arith.constant dense<0.000000e+00> : vector<1xf32>
    %41 = vector.multi_reduction <add>, %40, %cst_23 [1, 2] : vector<1x16x128xf32> to vector<1xf32>
    %42 = vector.shape_cast %41 : vector<1xf32> to vector<1x1x1xf32>
    %43 = vector.extract %42[0, 0, 0] : f32 from vector<1x1x1xf32>
    %44 = vector.broadcast %43 : f32 to vector<1x1xf32>
    %45 = vector.broadcast %44 : vector<1x1xf32> to vector<1x128xf32>
    %46 = arith.addf %39, %45 : vector<1x128xf32>
    %c0_24 = arith.constant 0 : index
    %c0_25 = arith.constant 0 : index
    %c0_26 = arith.constant 0 : index
    %47 = vector.load %arg9[%c0_24, %c0_25, %c0_26] : memref<1x1x128xf32, #tpu.memory_space<vmem>>, vector<1x1x128xf32>
    %48 = vector.shape_cast %47 : vector<1x1x128xf32> to vector<1x128xf32>
    %49 = vector.shape_cast %46 : vector<1x128xf32> to vector<1x1x128xf32>
    tpu.vector_store %arg9[%c0_24, %c0_25, %c0_26], %49 {strides = array<i32>} : memref<1x1x128xf32, #tpu.memory_space<vmem>>, vector<1x1x128xf32>,
    %c0_27 = arith.constant 0 : index
    %c0_28 = arith.constant 0 : index
    %c0_29 = arith.constant 0 : index
    %50 = vector.load %arg10[%c0_27, %c0_28, %c0_29] : memref<1x1x128xf32, #tpu.memory_space<vmem>>, vector<1x1x128xf32>
    %51 = vector.shape_cast %50 : vector<1x1x128xf32> to vector<1x128xf32>
    %52 = arith.mulf %31, %31 : vector<16x128xf32>
    %53 = vector.shape_cast %52 : vector<16x128xf32> to vector<1x16x128xf32>
    %cst_30 = arith.constant dense<0.000000e+00> : vector<1xf32>
    %54 = vector.multi_reduction <add>, %53, %cst_30 [1, 2] : vector<1x16x128xf32> to vector<1xf32>
    %55 = vector.shape_cast %54 : vector<1xf32> to vector<1x1x1xf32>
    %56 = vector.extract %55[0, 0, 0] : f32 from vector<1x1x1xf32>
    %57 = vector.broadcast %56 : f32 to vector<1x1xf32>
    %58 = vector.broadcast %57 : vector<1x1xf32> to vector<1x128xf32>
    %59 = arith.addf %51, %58 : vector<1x128xf32>
    %c0_31 = arith.constant 0 : index
    %c0_32 = arith.constant 0 : index
    %c0_33 = arith.constant 0 : index
    %60 = vector.load %arg10[%c0_31, %c0_32, %c0_33] : memref<1x1x128xf32, #tpu.memory_space<vmem>>, vector<1x1x128xf32>
    %61 = vector.shape_cast %60 : vector<1x1x128xf32> to vector<1x128xf32>
    %62 = vector.shape_cast %59 : vector<1x128xf32> to vector<1x1x128xf32>
    tpu.vector_store %arg10[%c0_31, %c0_32, %c0_33], %62 {strides = array<i32>} : memref<1x1x128xf32, #tpu.memory_space<vmem>>, vector<1x1x128xf32>,
    return
  }
  func.func @transform_0(%arg0: i32, %arg1: i32) -> (i32, i32, i32) {
    %c0_i32 = arith.constant 0 : i32
    %c0_i32_0 = arith.constant 0 : i32
    return %arg0, %c0_i32, %arg1 : i32, i32, i32
  }
  func.func @transform_1(%arg0: i32, %arg1: i32) -> (i32, i32, i32) {
    %c0_i32 = arith.constant 0 : i32
    %c0_i32_0 = arith.constant 0 : i32
    %c0_i32_1 = arith.constant 0 : i32
    return %arg0, %c0_i32, %c0_i32_0 : i32, i32, i32
  }
  func.func @transform_2(%arg0: i32, %arg1: i32) -> (i32, i32, i32) {
    %c0_i32 = arith.constant 0 : i32
    %c0_i32_0 = arith.constant 0 : i32
    %c0_i32_1 = arith.constant 0 : i32
    return %arg0, %c0_i32, %c0_i32_0 : i32, i32, i32
  }
  func.func @transform_3(%arg0: i32, %arg1: i32) -> (i32, i32) {
    %c0_i32 = arith.constant 0 : i32
    %c0_i32_0 = arith.constant 0 : i32
    %c0_i32_1 = arith.constant 0 : i32
    return %c0_i32, %c0_i32_0 : i32, i32
  }
  func.func @transform_4(%arg0: i32, %arg1: i32) -> (i32, i32) {
    %c0_i32 = arith.constant 0 : i32
    %c0_i32_0 = arith.constant 0 : i32
    %c0_i32_1 = arith.constant 0 : i32
    return %c0_i32, %c0_i32_0 : i32, i32
  }
  func.func @transform_5(%arg0: i32, %arg1: i32) -> (i32, i32) {
    %c0_i32 = arith.constant 0 : i32
    %c0_i32_0 = arith.constant 0 : i32
    %c0_i32_1 = arith.constant 0 : i32
    return %c0_i32, %c0_i32_0 : i32, i32
  }
  func.func @transform_6(%arg0: i32, %arg1: i32) -> (i32, i32, i32) {
    %c0_i32 = arith.constant 0 : i32
    %c0_i32_0 = arith.constant 0 : i32
    return %arg0, %c0_i32, %arg1 : i32, i32, i32
  }
  func.func @transform_7(%arg0: i32, %arg1: i32) -> (i32, i32, i32) {
    %c0_i32 = arith.constant 0 : i32
    %c0_i32_0 = arith.constant 0 : i32
    %c0_i32_1 = arith.constant 0 : i32
    return %arg0, %c0_i32, %c0_i32_0 : i32, i32, i32
  }
  func.func @transform_8(%arg0: i32, %arg1: i32) -> (i32, i32, i32) {
    %c0_i32 = arith.constant 0 : i32
    %c0_i32_0 = arith.constant 0 : i32
    %c0_i32_1 = arith.constant 0 : i32
    return %arg0, %c0_i32, %c0_i32_0 : i32, i32, i32
  }
}

</mosaic_0001>

<bundles_post_ra>
// kernel: tpu_custom_call.1
= control target key start
LH: loop header
LB: loop body
LE: loop exit
PB: predicated region body
PF: predicated region fallthrough
CT: control target
= control target key end

     0   :  { %s1518_s0 = inlined_call_operand.vmem [shape: f32[2,16,256], index: 0, kind: input, shape index: {}]   ;;  %s1519_s1 = inlined_call_operand.vmem [shape: f32[2,16,1], index: 1, kind: input, shape index: {}]   ;;  %s1520_s2 = inlined_call_operand.vmem [shape: f32[2,16,1], index: 2, kind: input, shape index: {}]   ;;  %s1521_s3 = inlined_call_operand.vmem [shape: bf16[16,16], index: 3, kind: input, shape index: {}]   ;;  %s1522_s4 = inlined_call_operand.vmem [shape: f32[16,1], index: 4, kind: input, shape index: {}]   ;;  %s1523_s5 = inlined_call_operand.vmem [shape: f32[16,1], index: 5, kind: input, shape index: {}]   ;;  %s1524_s6 = inlined_call_operand.hbm [shape: f32[2,16,256], index: 6, kind: output, shape index: {0}]   ;;  %s1525_s7 = inlined_call_operand.hbm [shape: f32[2,1,128], index: 7, kind: output, shape index: {1}]   ;;  %s1526_s8 = inlined_call_operand.hbm [shape: f32[2,1,128], index: 8, kind: output, shape index: {2}]  }
   0x1   :  { %1537 = sst [smem:[#allocation14_spill]] %s1518_s0 }
   0x2   :  { %1538 = sst [smem:[#allocation15_spill]] %s1519_s1 }
   0x3   :  { %1539 = sst [smem:[#allocation16_spill]] %s1520_s2 }
   0x4   :  { %1540 = sst [smem:[#allocation17_spill]] %s1521_s3 }
   0x5   :  { %1541 = sst [smem:[#allocation18_spill]] %s1522_s4 }
   0x6   :  { %1542 = sst [smem:[#allocation19_spill]] %s1523_s5 }
   0x7   :  { %1543 = sst [smem:[#allocation20_spill]] %s1524_s6 }
   0x8   :  { %1544 = sst [smem:[#allocation21_spill]] %s1525_s7 }
   0x9   :  { %1545 = sst [smem:[#allocation22_spill]] %s1526_s8 }
   0xa   :  { %14 = vsyncpa [#allocation4], 0 }
   0xb   :  { %16 = vsyncpa [#allocation4 + $0x1], 0 }
   0xc   :  { %17 = vsyncpa [#allocation6], 0 }
   0xd   :  { %19 = vsyncpa [#allocation6 + $0x1], 0  ;;  %s1226_s27 = smov 0   ;;  %s1228_s28 = smov 0  }
   0xe   :  { %s1230_s29 = smov 0   ;;  %s1232_s30 = smov 0  }
   0xf   :  { %s1234_s9 = smov 0   ;;  %s1236_s10 = smov 0  }
  0x10   :  { %s1238_s11 = smov 0   ;;  %s1240_s12 = smov 0  }
  0x11   :  { %s1242_s13 = smov 0   ;;  %s1244_s14 = smov 0  }
  0x12   :  { %s1246_s15 = smov 0  }
  0x13 LB: > { %1546 = sst [smem:[#allocation10_spill]] %s1146_s30  ;;  %s1527_s16 = sadd.s32 4294967295, %s1174_s15   ;;  %s1174_s15 = sphi %s1246_s15, %s25_s15   ;;  %s1170_s14 = sphi %s1244_s14, %s1572_s14   ;;  %s1166_s13 = sphi %s1242_s13, %s1580_s13   ;;  %s1162_s12 = sphi %s1240_s12, %s1570_s12   ;;  %s1158_s11 = sphi %s1238_s11, %s1579_s11   ;;  %s1154_s10 = sphi %s1236_s10, %s1578_s10   ;;  %s1150_s9 = sphi %s1234_s9, %s1577_s9   ;;  %s1146_s30 = sphi %s1232_s30, %s1576_s30   ;;  %s1142_s29 = sphi %s1230_s29, %s1575_s29   ;;  %s1138_s28 = sphi %s1228_s28, %s1574_s28   ;;  %s1134_s27 = sphi %s1226_s27, %s1573_s27  }
  0x14   : > { %1547 = sst [smem:[#allocation11_spill]] %s1170_s14  ;;  %s1528_s17 = sadd.s32 4294967294, %s1174_s15  }
  0x15   : > { %s34_s18 = sadd.s32 1, %s1166_s13  ;;  %s37_s19 = sadd.s32 1, %s1170_s14 }
  0x16   : > { %p35_p0 = scmp.ge.s32.totalorder %s34_s18, 2  ;;  %s46_s20 = sadd.s32 1, %s1154_s10 }
  0x17   : > { %p53_p1 = scmp.ne.s32.totalorder %s1154_s10, %s1150_s9  ;;  %p54_p2 = scmp.eq.s32.totalorder %s1174_s15, 0 }
  0x18   : > { %s1582_s18 = smov (%p35_p0, %s34_s18), 0  ;;  %s1584_s19 = smov (!%p35_p0, %s37_s19), %s1170_s14 }
  0x19   : > { %1548 = sst [smem:[#allocation12_spill]] %s1582_s18  ;;  %s42_s21 = ssub.s32 %s1166_s13, %s1582_s18 }
  0x1a   : > { %p1294_p3 = por %p54_p2, %p53_p1  ;;  %p39_p4 = scmp.ge.s32.totalorder %s1584_s19, 2 }
  0x1b   : > { %p1300_p5 = scmp.eq.s32.totalorder %s1527_s16, 3  ;;  %p205_p6 = scmp.ne.s32.totalorder %s1150_s9, %s1146_s30 }
  0x1c   : > { %p1308_p7 = scmp.eq.s32.totalorder %s1528_s17, 3  ;;  %s1586_s19 = smov (%p39_p4, %s1584_s19), 0 }
  0x1d   : > { %1552 = sst [smem:[#allocation13_spill]] %s1586_s19  ;;  %p1316_p8 = por %p1300_p5, %p53_p1 }
  0x1e   : > { %p1322_p9 = por %p1308_p7, %p205_p6  ;;  %s41_s16 = ssub.s32 %s1170_s14, %s1586_s19 }
  0x1f   : > { %s215_s17 = sadd.s32 1, %s1142_s29  ;;  %s43_s18 = sor.u32 %s42_s21, %s41_s16 }
  0x20   : > { %p213_p10 = scmp.eq.s32.totalorder %s41_s16, 0  ;;  %p44_p11 = scmp.eq.s32.totalorder %s43_s18, 0 }
  0x21   : > { %p225_p12 = scmp.ne.s32.totalorder %s1142_s29, %s1138_s28  ;;  %p231_p0 = scmp.ne.s32.totalorder %s1138_s28, %s1134_s27 }
  0x22   : > { %s1332_s30 = scalar_select %p213_p10, %s1142_s29, %s215_s17  }
  0x23   : > { %s1335_s8 = scalar_select %p44_p11, %s1154_s10, %s46_s20  }
  0x24   : > { %p1339_p13 = por %p225_p12, %p1300_p5  ;;  %p1347_p1 = por %p231_p0, %p1308_p7 }
  0x25   : > { %p834_p2 = scmp.ge.s32.totalorder %s1174_s15, 4 }
  0x27   : > { %283 = sbr.rel (%p834_p2) target bundleno = 56 (0x38), region = 28 }
  0x2c   : > { %286 = sbr.rel (!%p1294_p3) target bundleno = 56 (0x38), region = 32  ;;  %s288_s16 = sand.u32 (%p1294_p3), 1, %s1154_s10  }
  0x2d   : > { %s836_s17 = sshll.u32 (%p1294_p3), %s1170_s14, 2  ;;  %s835_s18 = sshll.u32 (%p1294_p3), %s288_s16, 4 }
  0x2e   : > { %s292_s20 = sadd.s32 (%p1294_p3), %s1166_s13, %s836_s17  ;;  %s1557_s0 = sld [smem:[#allocation14_spill]] (%p1294_p3) }
  0x2f   : > { %s837_s21 = sshll.u32 (%p1294_p3), %s292_s20, 3  ;;  %s290_s19 = scalar_lea.vmem (%p1294_p3), [#allocation2], %s835_s18 }
  0x34   : > { %s294_s24 = scalar_lea.vmem %s1557_s0, %s837_s21 }
  0x35   : > { %v325_v0 = vld [vmem:[%s294_s24] sm:$0xff]  ;;  %v327_v1 = vld [vmem:[%s294_s24 + $0x10] sm:$0xff] }
  0x36   : > { %326 = vst [vmem:[%s290_s19] sm:$0xff] %v325_v0 }
  0x37   : > { %328 = vst [vmem:[%s290_s19 + $0x8] sm:$0xff] %v327_v1 }
  0x38 PF: > { %p838_p3 = scmp.ge.s32.totalorder %s1174_s15, 1  ;;  %p349_p4 = scmp.lt.s32.totalorder %s1174_s15, 5 }
  0x3a   : > { %p350_p5 = pnand %p838_p3, %p349_p4 }
  0x3b   : > { %p407_p6 = scmp.lt.s32.totalorder (!%p350_p5), %s1162_s12, 1  ;;  %s1558_s2 = sld [smem:[#allocation16_spill]] (!%p350_p5) }
  0x3c   : > { %353 = sbr.rel (%p350_p5) target bundleno = 606 (0x25e), region = 78  ;;  %s1559_s1 = sld [smem:[#allocation15_spill]] (!%p350_p5) }
  0x3d   : > { %s399_s23 = sand.u32 (!%p350_p5), 1, %s1138_s28   ;;  %s1560_s5 = sld [smem:[#allocation19_spill]] (!%p350_p5) }
  0x3e   : > { %s1561_s4 = sld [smem:[#allocation18_spill]] (!%p350_p5)  ;;  %s1407_s21 = scalar_lea.vmem (!%p350_p5), [#allocation5], %s399_s23 }
  0x3f   : > { %s1562_s3 = sld [smem:[#allocation17_spill]] (!%p350_p5)  ;;  %p854_p7 = scmp.ne.s32.totalorder (!%p350_p5), %s1158_s11, 0 }
  0x41   : > { %v1176_v2 = vmov 0   ;;  %s408_s22 = scalar_select %p407_p6, %s1162_s12, 1  ;;  %vm508_vm8 = vcmask 130048  }
  0x42   : > { %978 = vset.pattern.permute.xlu1 %v1176_v2  ;;  %977 = vset.pattern.permute.xlu0 %v1176_v2 }
  0x43   : > { %979 = vset.pattern.permute.xlu2 %v1176_v2  ;;  %s860_s16 = sshll.u32 %s408_s22, 4  ;;  %v567_v7 = vld [vmem:[%s1560_s5 + $0x8] sm:$0xff]  ;;  %v566_v8 = vld [vmem:[%s1560_s5] sm:$0xff] }
  0x44   : > { %s416_s18 = scalar_lea.vmem %s1558_s2, %s860_s16  ;;  %s411_s27 = scalar_lea.vmem %s1559_s1, %s860_s16  ;;  %v491_v23 = vld [vmem:[%s1561_s4] sm:$0xff]  ;;  %v492_v27 = vld [vmem:[%s1561_s4 + $0x8] sm:$0xff] }
  0x45   : > { %v434_v3 = vld [vmem:[%s416_s18] sm:$0xff]  ;;  %v435_v5 = vld [vmem:[%s416_s18 + $0x8] sm:$0xff]  ;;  %s1535_s16 = sand.u32 1, %s1150_s9   ;;  %495 = vperm.xlu2 %979, %v491_v23  }
  0x46   : > { %v420_v4 = vld [vmem:[%s411_s27] sm:$0xff]  ;;  %438 = vperm.xlu1 %978, %v434_v3   ;;  %v421_v6 = vld [vmem:[%s411_s27 + $0x8] sm:$0xff]  ;;  %s1380_s20 = sshll.u32 %s1535_s16, 4  ;;  %s1411_s27 = scalar_lea.vmem [#allocation7], %s399_s23 }
  0x47   : > { %424 = vperm.xlu0 %977, %v420_v4   ;;  %s358_s18 = scalar_lea.vmem [#allocation2], %s1380_s20  ;;  %v862_v50 = vld [vmem:[%s1562_s3] sm:$0xff] }
  0x48   : > { %v1383_v9 = vld [vmem:[%s358_s18] sm:$0xff]  ;;  %v1386_v15 = vld [vmem:[%s358_s18 + $0x8] sm:$0xff]  ;;  %s1400_s18 = scalar_lea.vmem [#allocation3], %s1380_s20 }
  0x4d   : > { %500 = vperm.xlu2 %979, %v492_v27  }
  0x4e   : > { %443 = vperm.xlu1 %978, %v435_v5  }
  0x4f   : > { %429 = vperm.xlu0 %977, %v421_v6  }
  0x56   : > { %575 = vperm.xlu1 %978, %v567_v7  }
  0x57   : > { %570 = vperm.xlu0 %977, %v566_v8  }
  0x9f   : > { %v496_v51 = vpop.permute.xlu2 %495 }
  0xa7   : > { %v501_v55 = vpop.permute.xlu2 %500 }
  0xb8   : > { %v439_v10 = vpop.permute.xlu1 %438 }
  0xb9   : > { %v425_v11 = vpop.permute.xlu0 %424 }
  0xba   : > { %v432_v12 = vmul.f32 %v425_v11, %v1383_v9 }
  0xbc   : > { %v446_v13 = vadd.f32 %v439_v10, %v432_v12 }
  0xbe   : > { %v845_v14 = vmul.f32 -1.442695, %v446_v13 }
  0xc0   : > { %980 = vpow2.f32 %v845_v14  ;;  %v444_v18 = vpop.permute.xlu1 %443 }
  0xc1   : > { %v430_v16 = vpop.permute.xlu0 %429 }
  0xc2   : > { %v433_v17 = vmul.f32 %v430_v16, %v1386_v15 }
  0xc4   : > { %v447_v19 = vadd.f32 %v444_v18, %v433_v17 }
  0xc6   : > { %v981_v20 = vpop.eup %980  ;;  %v846_v21 = vmul.f32 -1.442695, %v447_v19 }
  0xc7   : > { %v454_v22 = vadd.f32 1.0, %v981_v20 }
  0xc8   : > { %982 = vpow2.f32 %v846_v21 }
  0xc9   : > { %984 = vrcp.f32 %v454_v22  ;;  %v467_v34 = vand.u32 2147483648, %v454_v22  ;;  %vm461_vm1 = vweird.f32 %v454_v22  ;;  %v465_v35 = vand.u32 2147483647, %v454_v22  ;;  %v571_v14 = vpop.permute.xlu0 %570 }
  0xcb   : > { %v468_v41 = vor.u32 1.1754944e-38, %v467_v34  ;;  %vm466_vm4 = vcmp.eq.f32.partialorder %v465_v35, 8.507059e+37 }
  0xce   : > { %v983_v24 = vpop.eup %982 }
  0xcf   : > { %v985_v25 = vpop.eup %984  ;;  %v455_v26 = vadd.f32 1.0, %v983_v24 }
  0xd0   : > { %v457_v28 = vmul.f32 %v985_v25, %v454_v22  ;;  %vm462_vm0 = vweird.f32 %v985_v25 }
  0xd1   : > { %986 = vrcp.f32 %v455_v26  ;;  %vm463_vm2 = vmor %vm461_vm1, %vm462_vm0  ;;  %v482_v37 = vand.u32 2147483648, %v455_v26  ;;  %v480_v40 = vand.u32 2147483647, %v455_v26  ;;  %vm476_vm5 = vweird.f32 %v455_v26 }
  0xd2   : > { %v458_v29 = vsub.f32 1.0, %v457_v28 }
  0xd3   : > { %v483_v44 = vor.u32 1.1754944e-38, %v482_v37  ;;  %vm481_vm7 = vcmp.eq.f32.partialorder %v480_v40, 8.507059e+37 }
  0xd4   : > { %v459_v30 = vmul.f32 %v985_v25, %v458_v29 }
  0xd6   : > { %v460_v32 = vadd.f32 %v985_v25, %v459_v30 }
  0xd7   : > { %v987_v31 = vpop.eup %986 }
  0xd8   : > { %v472_v33 = vmul.f32 %v987_v31, %v455_v26  ;;  %v464_v38 = vsel %vm463_vm2, %v985_v25, %v460_v32  ;;  %vm477_vm3 = vweird.f32 %v987_v31  ;;  %v576_v26 = vpop.permute.xlu1 %575 }
  0xd9   : > { %v469_v43 = vsel %vm466_vm4, %v468_v41, %v464_v38  ;;  %vm478_vm6 = vmor %vm476_vm5, %vm477_vm3 }
  0xda   : > { %v473_v36 = vsub.f32 1.0, %v472_v33  ;;  %v486_v47 = vmul.f32 %v469_v43, %v446_v13 }
  0xdc   : > { %v474_v39 = vmul.f32 %v987_v31, %v473_v36 }
  0xde   : > { %v475_v42 = vadd.f32 %v987_v31, %v474_v39 }
  0xe0   : > { %v479_v45 = vsel %vm478_vm6, %v987_v31, %v475_v42 }
  0xe1   : > { %v484_v46 = vsel %vm481_vm7, %v483_v44, %v479_v45 }
  0xe2   : > { %v487_v48 = vmul.f32 %v484_v46, %v447_v19 }
  0xe4   : > { %v490_v49 = vpack.c.bf16 %v487_v48, %v486_v47 }
  0xe6   : > { %519 = vmatpush.bf16.msra.mxu0 %v490_v49 }
  0xe9   : > { %851 = vmatmul.msk.bf16.vlgmr.msra.gmra.mxu0 %vm508_vm8, %v862_v50 }
 0x166   : > { %v521_v52 = vpop.f32.mrf.mxu0 }
 0x167   : > { %v522_v53 = vadd.f32 %v521_v52, %v496_v51 }
 0x169   : > { %v852_v54 = vmul.f32 -1.442695, %v522_v53 }
 0x16b   : > { %988 = vpow2.f32 %v852_v54 }
 0x16e   : > { %v523_v56 = vpop.f32.mrf.mxu0 }
 0x16f   : > { %v524_v57 = vadd.f32 %v523_v56, %v501_v55 }
 0x171   : > { %v989_v58 = vpop.eup %988  ;;  %v853_v59 = vmul.f32 -1.442695, %v524_v57 }
 0x172   : > { %v532_v60 = vadd.f32 1.0, %v989_v58 }
 0x173   : > { %990 = vpow2.f32 %v853_v59 }
 0x174   : > { %992 = vrcp.f32 %v532_v60  ;;  %v545_v2 = vand.u32 2147483648, %v532_v60  ;;  %v543_v4 = vand.u32 2147483647, %v532_v60  ;;  %vm539_vm10 = vweird.f32 %v532_v60 }
 0x176   : > { %v546_v7 = vor.u32 1.1754944e-38, %v545_v2  ;;  %vm544_vm12 = vcmp.eq.f32.partialorder %v543_v4, 8.507059e+37 }
 0x179   : > { %v991_v61 = vpop.eup %990 }
 0x17a   : > { %v993_v62 = vpop.eup %992  ;;  %v533_v63 = vadd.f32 1.0, %v991_v61 }
 0x17b   : > { %v535_v0 = vmul.f32 %v993_v62, %v532_v60  ;;  %vm540_vm9 = vweird.f32 %v993_v62 }
 0x17c   : > { %994 = vrcp.f32 %v533_v63  ;;  %vm541_vm11 = vmor %vm539_vm10, %vm540_vm9  ;;  %v560_v16 = vand.u32 2147483648, %v533_v63  ;;  %v558_v19 = vand.u32 2147483647, %v533_v63  ;;  %vm554_vm14 = vweird.f32 %v533_v63 }
 0x17d   : > { %v536_v1 = vsub.f32 1.0, %v535_v0 }
 0x17e   : > { %v561_v22 = vor.u32 1.1754944e-38, %v560_v16  ;;  %vm559_vm0 = vcmp.eq.f32.partialorder %v558_v19, 8.507059e+37 }
 0x17f   : > { %v537_v3 = vmul.f32 %v993_v62, %v536_v1 }
 0x181   : > { %v538_v5 = vadd.f32 %v993_v62, %v537_v3 }
 0x182   : > { %v995_v6 = vpop.eup %994 }
 0x183   : > { %v542_v8 = vsel %vm541_vm11, %v993_v62, %v538_v5  ;;  %v550_v10 = vmul.f32 %v995_v6, %v533_v63  ;;  %vm555_vm13 = vweird.f32 %v995_v6 }
 0x184   : > { %v547_v11 = vsel %vm544_vm12, %v546_v7, %v542_v8  ;;  %vm556_vm15 = vmor %vm554_vm14, %vm555_vm13 }
 0x185   : > { %v564_v12 = vmul.f32 %v547_v11, %v522_v53  ;;  %v551_v13 = vsub.f32 1.0, %v550_v10 }
 0x187   : > { %v578_v17 = vmul.f32 %v571_v14, %v564_v12  ;;  %v552_v18 = vmul.f32 %v995_v6, %v551_v13 }
 0x189   : > { %v580_v20 = vadd.f32 %v578_v17, %v1383_v9  ;;  %v553_v21 = vadd.f32 %v995_v6, %v552_v18 }
 0x18b   : > { %582 = vst [vmem:[%s1400_s18] sm:$0xff] %v580_v20  ;;  %v557_v23 = vsel %vm556_vm15, %v995_v6, %v553_v21 }
 0x18c   : > { %v562_v24 = vsel %vm559_vm0, %v561_v22, %v557_v23 }
 0x18d   : > { %v565_v25 = vmul.f32 %v562_v24, %v524_v57 }
 0x18f   : > { %v579_v27 = vmul.f32 %v576_v26, %v565_v25  ;;  %587 = sbr.rel (%p854_p7) target bundleno = 407 (0x197), region = 86 }
 0x191   : > { %v581_v28 = vadd.f32 %v579_v27, %v1386_v15 }
 0x193   : > { %583 = vst [vmem:[%s1400_s18 + $0x8] sm:$0xff] %v581_v28 }
 0x194   : > { %v1177_v9 = vmov 0.0  }
 0x195   : > { %588 = vst [vmem:[%s1407_s21] sm:$0x1] %v1177_v9 }
 0x196   : > { %589 = vst [vmem:[%s1411_s27] sm:$0x1] %v1177_v9 }
 0x197 PF: > { %v591_v29 = vadd.f32 %v581_v28, %v580_v20  ;;  %v605_v15 = vmul.f32 %v580_v20, %v580_v20  ;;  %v606_v30 = vmul.f32 %v581_v28, %v581_v28  ;;  %s856_s23 = sshll.u32 %s1162_s12, 2  ;;  %s1563_s19 = sld [smem:[#allocation20_spill]] }
 0x198   : > { %s639_s20 = sadd.s32 %s1158_s11, %s856_s23  ;;  %s642_s0 = sshll.u32 %s1400_s18, 4  ;;  %s643_s0 = int_to_ptr.vmem [resolvable:$true] %s642_s0 }
 0x199   : > { %592 = vadd.xlane.f32.xlu0 %v591_v29  ;;  %v607_v31 = vadd.f32 %v606_v30, %v605_v15  ;;  %s857_s24 = sshll.u32 %s639_s20, 3  ;;  %s1564_s2 = sand.u32 1, %s1150_s9  }
 0x19a   : > { %s621_s3 = scalar_lea.sflag [#allocation4], %s1564_s2 }
 0x19d   : > { %s641_s16 = scalar_lea.hbm %s1563_s19, %s857_s24  ;;  %s1016_s23 = scalar_lea.hbm %s1563_s19, 64 }
 0x19e   : > { %s644_s1 = sshll.u32 %s641_s16, 4  ;;  %s645_s1 = int_to_ptr.hbm [resolvable:$true] %s644_s1 }
 0x19f   : > { %s1010_s4 = sshra.s32 %s645_s1, 4  ;;  %s1011_s4 = int_to_ptr.hbm [resolvable:$true] %s1010_s4 }
 0x1a0   : > { %s1012_s5 = scalar_lea.hbm %s1011_s4, 16  ;;  %p1017_p0 = scmp.lt.s32.totalorder %s1011_s4, %s1563_s19 }
 0x1a1   : > { %608 = vadd.xlane.f32.xlu0 %v607_v31  ;;  %p1013_p10 = scmp.ne.s32.totalorder %s1011_s4, %s1012_s5  ;;  %p1018_p2 = scmp.lt.s32.totalorder %s1016_s23, %s1012_s5 }
 0x1a3   : > { %p1014_p11 = pnand %p1013_p10, %p1316_p8  ;;  %p1019_p3 = por %p1018_p2, %p1017_p0 }
 0x1a5   : > { %p1015_p12 = pneg %p1014_p11 }
 0x1a7   : > { %p1020_p4 = pnand %p1019_p3, %p1015_p12 }
 0x1a9   : > { %1023 = shalt.err (!%p1020_p4)
}
 0x1aa   : > { %s1178_s2 = smov 128   ;;  %s1179_s16 = smov 256   ;;  %v590_v46 = vld [vmem:[%s1407_s21] sm:$0x1] }
 0x1ab   : > { %s1180_s18 = smov 8   ;;  %s1566_s5 = sadd.s32 4294967295, %s1174_s15  }
 0x1ac   : > { %867 = dma.vmem_to_hbm [thread:$0]  (%p1316_p8), %s643_s0, 256, %s645_s1, %s621_s3, %s1178_s2, %s1179_s16, %s1180_s18  }
 0x1ad   : > { %s1565_s3 = sld [smem:[#allocation21_spill]]  ;;  %s1440_s14 = sand.u32 1, %s1566_s5  }
 0x1ae   : > { %s658_s25 = sshll.u32 %s1407_s21, 4  ;;  %s1567_s20 = sld [smem:[#allocation22_spill]]  ;;  %s659_s25 = int_to_ptr.vmem [resolvable:$true] %s658_s25 }
 0x1af   : > { %s626_s2 = scalar_lea.sflag [#allocation6], %s1440_s14 }
 0x1b3   : > { %s656_s4 = scalar_lea.hbm %s1565_s3, %s1162_s12 }
 0x1b4   : > { %s660_s24 = sshll.u32 %s656_s4, 4  ;;  %s669_s22 = scalar_lea.hbm %s1567_s20, %s1162_s12  ;;  %s661_s24 = int_to_ptr.hbm [resolvable:$true] %s660_s24 }
 0x1b5   : > { %s1038_s16 = sshra.s32 %s661_s24, 4  ;;  %s1044_s4 = scalar_lea.hbm %s1565_s3, 2  ;;  %s1039_s16 = int_to_ptr.hbm [resolvable:$true] %s1038_s16 }
 0x1b6   : > { %s1040_s18 = scalar_lea.hbm %s1039_s16, 1  ;;  %p1045_p7 = scmp.lt.s32.totalorder %s1039_s16, %s1565_s3 }
 0x1b7   : > { %p1041_p8 = scmp.ne.s32.totalorder %s1039_s16, %s1040_s18  ;;  %p1046_p10 = scmp.lt.s32.totalorder %s1044_s4, %s1040_s18 }
 0x1b9   : > { %p1042_p5 = pnand %p1041_p8, %p1339_p13  ;;  %p1047_p11 = por %p1046_p10, %p1045_p7 }
 0x1bb   : > { %p1043_p6 = pneg %p1042_p5 }
 0x1bd   : > { %p1048_p12 = pnand %p1047_p11, %p1043_p6 }
 0x20c   : > { %v593_v32 = vpop.xlane.xlu0 %592 }
 0x20d   : > { %v594_v33 = vrot.slane %v593_v32, 4 }
 0x20f   : > { %v595_v34 = vadd.f32 %v594_v33, %v593_v32 }
 0x211   : > { %v596_v35 = vrot.slane %v595_v34, 2 }
 0x213   : > { %v597_v36 = vadd.f32 %v596_v35, %v595_v34 }
 0x214   : > { %v609_v37 = vpop.xlane.xlu0 %608 }
 0x215   : > { %v610_v38 = vrot.slane %v609_v37, 4  ;;  %v598_v39 = vrot.slane %v597_v36, 1 }
 0x217   : > { %v611_v40 = vadd.f32 %v610_v38, %v609_v37  ;;  %v599_v41 = vadd.f32 %v598_v39, %v597_v36 }
 0x219   : > { %v612_v42 = vrot.slane %v611_v40, 2  ;;  %863 = vpush %v599_v41 }
 0x21b   : > { %v613_v43 = vadd.f32 %v612_v42, %v611_v40 }
 0x21d   : > { %v614_v44 = vrot.slane %v613_v43, 1 }
 0x21f   : > { %v615_v45 = vadd.f32 %v614_v44, %v613_v43 }
 0x221   : > { %865 = vpush %v615_v45 }
 0x24a   : > { %s864_s17 = spop %863 }
 0x24b   : > { %v601_v47 = vstv %s864_s17 }
 0x24c   : > { %v602_v48 = vadd.f32 %v601_v47, %v590_v46 }
 0x24e   : > { %603 = vst [vmem:[%s1407_s21] sm:$0x1] %v602_v48 }
 0x24f   : > { %1051 = shalt.err (!%p1048_p12)
}
 0x250   : > { %868 = dma.vmem_to_hbm [thread:$0]  (%p1339_p13), %s659_s25, 16, %s661_s24, %s626_s2   ;;  %v604_v49 = vld [vmem:[%s1411_s27] sm:$0x1] }
 0x251   : > { %s671_s12 = sshll.u32 %s1411_s27, 4  ;;  %s673_s21 = sshll.u32 %s669_s22, 4  ;;  %s672_s12 = int_to_ptr.vmem [resolvable:$true] %s671_s12  ;;  %s674_s21 = int_to_ptr.hbm [resolvable:$true] %s673_s21 }
 0x252   : > { %s866_s11 = spop %865  ;;  %s1066_s23 = sshra.s32 %s674_s21, 4  ;;  %s1067_s23 = int_to_ptr.hbm [resolvable:$true] %s1066_s23 }
 0x253   : > { %v617_v50 = vstv %s866_s11  ;;  %s1068_s16 = scalar_lea.hbm %s1067_s23, 1  ;;  %s1072_s25 = scalar_lea.hbm %s1567_s20, 2 }
 0x254   : > { %v618_v51 = vadd.f32 %v617_v50, %v604_v49  ;;  %p1069_p0 = scmp.ne.s32.totalorder %s1067_s23, %s1068_s16  ;;  %p1073_p4 = scmp.lt.s32.totalorder %s1067_s23, %s1567_s20 }
 0x255   : > { %p1074_p8 = scmp.lt.s32.totalorder %s1072_s25, %s1068_s16 }
 0x256   : > { %619 = vst [vmem:[%s1411_s27] sm:$0x1] %v618_v51  ;;  %p1070_p2 = pnand %p1069_p0, %p1339_p13 }
 0x257   : > { %p1075_p5 = por %p1074_p8, %p1073_p4 }
 0x258   : > { %p1071_p3 = pneg %p1070_p2 }
 0x25a   : > { %p1076_p6 = pnand %p1075_p5, %p1071_p3 }
 0x25c   : > { %1079 = shalt.err (!%p1076_p6)
}
 0x25d   : > { %869 = dma.vmem_to_hbm [thread:$0]  (%p1339_p13), %s672_s12, 16, %s674_s21, %s626_s2  }
 0x25e PF: > { %s1568_s27 = sld [smem:[#allocation10_spill]]  ;;  %p883_p7 = scmp.ge.s32.totalorder %s1174_s15, 2 }
 0x260   : > { %p874_p10 = pnand %p883_p7, %p1322_p9 }
 0x262   : > { %p875_p11 = pneg %p874_p10 }
 0x264   : > { %s685_s22 = sand.u32 1, %s1568_s27  }
 0x265   : > { %s686_s4 = scalar_lea.sflag [#allocation4], %s685_s22 }
 0x266   : > { %1125 = dma.done.wait (%p875_p11), %s686_s4, 256  }
 0x267   : > { %1127 = vsyncadd (%p875_p11), %s686_s4, 4294967040  ;;  %s1569_s5 = sadd.s32 4294967294, %s1174_s15   ;;  %p877_p12 = pnand %p883_p7, %p1347_p1 }
 0x268   : > { %s695_s17 = sand.u32 1, %s1569_s5  }
 0x269   : > { %p878_p0 = pneg %p877_p12  ;;  %s696_s7 = scalar_lea.sflag [#allocation6], %s695_s17 }
 0x26b   : > { %1129 = dma.done.wait (%p878_p0), %s696_s7, 32  }
 0x26c   : > { %1131 = vsyncadd (%p878_p0), %s696_s7, 4294967264  ;;  %s25_s15 = sadd.s32 1, %s1174_s15   ;;  %s1570_s12 = sld [smem:[#allocation11_spill]] }
 0x26d   : > { %p22_p13 = scmp.ge.s32.totalorder %s25_s15, 6   ;;  %s1571_s26 = sld [smem:[#allocation12_spill]] }
 0x26e   : > { %s1572_s14 = sld [smem:[#allocation13_spill]]  ;;  %s1573_s27 = smov %s1138_s28 }
 0x26f   : > { %s1574_s28 = smov %s1142_s29  ;;  %s1575_s29 = smov %s1332_s30 }
 0x270   : > { %s1576_s30 = smov %s1150_s9  ;;  %s1577_s9 = smov %s1154_s10 }
 0x271   : > { %s1578_s10 = smov %s1335_s8  ;;  %s1579_s11 = smov %s1166_s13 }
 0x272   :  { %24 = sbr.rel (!%p22_p13) target bundleno = 19 (0x13), region = 164 }
 0x273   : > { %s1580_s13 = smov %s1571_s26 }
 0x277   :  { %710 = vsyncpa [#allocation4], 1 }
 0x278   :  { %712 = vsyncpa [#allocation4 + $0x1], 1 }
 0x279   :  { %713 = vsyncpa [#allocation6], 1 }
 0x27a   :  { %715 = vsyncpa [#allocation6 + $0x1], 1 }

</bundles_post_ra>
